<compile_context>
chip_gen: v7x
topology: tpu7x:2x2x1
jax: 0.10.0
libtpu: 0.0.40
codegen_flags: <defaults>
</compile_context>

<pallas_src>
import functools

import jax
import jax.numpy as jnp
from jax.experimental import pallas as pl
from jax.experimental.pallas import tpu as pltpu


# ----------------------------------------------------------------------------
# Pallas kernel: fused (policy + value) matmul + per-row logsumexp
# ----------------------------------------------------------------------------
def _cat_value_head_kernel(x_ref, w_ref, b_ref, logits_ref, value_ref, lse_ref,
                           *, num_actions):
    # One fused matmul: columns [0, A) = policy logits, column A = value,
    # columns > A = zero-weight padding (never written to HBM).
    fused = jnp.dot(x_ref[...], w_ref[...],
                    preferred_element_type=jnp.float32)
    fused = fused + b_ref[...]                       # b packed as f32

    a = num_actions
    apad = fused.shape[-1]

    # logsumexp over the real action lanes only (mask value column + padding).
    lane = jax.lax.broadcasted_iota(jnp.int32, (1, apad), 1)
    masked = jnp.where(lane < a, fused, -jnp.inf)
    m = jnp.max(masked, axis=-1, keepdims=True)
    s = jnp.sum(jnp.exp(masked - m), axis=-1, keepdims=True)   # exp(-inf) = 0
    lse = m + jnp.log(s)

    # Exact-width stores only: A logit lanes, 1 value lane, 1 lse lane.
    logits_ref[...] = fused[:, :a].astype(logits_ref.dtype)
    value_ref[...] = fused[:, a:a + 1].astype(value_ref.dtype)
    lse_ref[...] = lse.astype(lse_ref.dtype)


# ----------------------------------------------------------------------------
# Parameter packing -- call ONCE at init / param-update time, not per forward.
# ----------------------------------------------------------------------------
def pack_categorical_value_head_params(w_pi, b_pi, w_v, b_v):
    """Pack [W_pi | W_v | 0] (D, a_pad) and [b_pi | b_v | 0] (1, a_pad).

    w_pi: [D, A], b_pi: [1, A] or [A], w_v: [D, 1], b_v: [1, 1] or [1].
    a_pad = round_up(A + 1, 128) so the matmul N dim is lane-aligned.
    """
    d, a = w_pi.shape
    a_pad = ((a + 1 + 127) // 128) * 128
    w_packed = jnp.zeros((d, a_pad), dtype=w_pi.dtype)
    w_packed = w_packed.at[:, :a].set(w_pi)
    w_packed = w_packed.at[:, a:a + 1].set(w_v.astype(w_pi.dtype))
    b_packed = jnp.zeros((1, a_pad), dtype=jnp.float32)
    b_packed = b_packed.at[:, :a].set(b_pi.reshape(1, a).astype(jnp.float32))
    b_packed = b_packed.at[:, a:a + 1].set(b_v.reshape(1, 1).astype(jnp.float32))
    return w_packed, b_packed


# ----------------------------------------------------------------------------
# Tiling / VMEM helpers
# ----------------------------------------------------------------------------
def _device_vmem_bytes():
    try:
        return int(pltpu.get_tpu_info().vmem_capacity_bytes)
    except Exception:
        return 64 << 20        # conservative: v7x per-TensorCore VMEM


def _choose_batch_tile(batch, d, num_actions, x_itemsize, out_itemsize,
                       resident_bytes, vmem_budget):
    """Largest batch tile (multiple of 8, <=1024) fitting the VMEM budget."""
    if batch <= 16:
        return batch                         # full-extent block is always legal
    # Per-row VMEM that scales with the tile: double-buffered x stream,
    # double-buffered (lane-padded) output tiles, fused f32 intermediate.
    out_lanes = ((num_actions + 127) // 128) * 128 + 256
    a_pad = ((num_actions + 1 + 127) // 128) * 128
    per_row = 2 * d * x_itemsize + 2 * out_lanes * out_itemsize + a_pad * 4
    avail = max(vmem_budget - resident_bytes - (4 << 20), 1 << 20)
    tb = int(avail // per_row)
    tb = min(tb, 1024)                       # 512-1024 rows ~ HBM-roofline sweet spot
    tb = min(tb, pl.cdiv(batch, 2))          # >=2 grid steps -> both v7x TCs busy
    tb = max(8, (tb // 8) * 8)
    return batch if tb >= batch else tb


def _resident_spec(shape, single_buffer):
    """VMEM-resident operand: constant index_map, optionally single-buffered."""
    if single_buffer:
        return pl.BlockSpec(shape, lambda i: (0, 0),
                            pipeline_mode=pl.Buffered(1))
    return pl.BlockSpec(shape, lambda i: (0, 0))


# ----------------------------------------------------------------------------
# Lightweight stand-in for torch.distributions.Categorical(logits=...)
# ----------------------------------------------------------------------------
class CategoricalLogits:
    """Holds raw logits + per-row logsumexp; log_probs formed lazily."""

    def __init__(self, logits, lse):
        self.logits = logits         # [B, A], unnormalized
        self._lse = lse              # [B, 1], f32

    @property
    def log_probs(self):
        return self.logits.astype(jnp.float32) - self._lse

    @property
    def probs(self):
        return jnp.exp(self.log_probs)


# ----------------------------------------------------------------------------
# Forward pass
# ----------------------------------------------------------------------------
def categorical_value_head(x, w_packed, b_packed, num_actions, *,
                           batch_tile=None):
    """x: [B, D]; (w_packed, b_packed) from pack_categorical_value_head_params.

    Returns (CategoricalLogits, value [B]).
    """
    B, D = x.shape
    a_pad = w_packed.shape[1]
    A = num_actions
    assert a_pad % 128 == 0 and A + 1 <= a_pad

    out_dtype = x.dtype                      # final stores cast once; math in f32
    x_item = jnp.dtype(x.dtype).itemsize
    w_item = jnp.dtype(w_packed.dtype).itemsize

    dev_vmem = _device_vmem_bytes()
    budget = (dev_vmem * 3) // 4             # never request more than the device has

    resident = D * a_pad * w_item + a_pad * 4    # single-buffered W | b

    if batch_tile is not None:
        tb = min(int(batch_tile), B)
    else:
        tb = _choose_batch_tile(B, D, A, x_item, 4, resident, budget)
    grid = (pl.cdiv(B, tb),)

    # Honest per-step VMEM estimate: double-buffered x + double-buffered
    # (lane-padded) outputs + fused f32 intermediate + resident weights.
    out_lanes = ((A + 127) // 128) * 128 + 256
    needed = (2 * tb * D * x_item
              + 2 * tb * out_lanes * 4
              + tb * a_pad * 4
              + resident)
    vmem_limit = int(min(budget, max(needed + (4 << 20), 16 << 20)))

    kernel = functools.partial(_cat_value_head_kernel, num_actions=A)

    out_shape = (
        jax.ShapeDtypeStruct((B, A), out_dtype),     # logits (exact width)
        jax.ShapeDtypeStruct((B, 1), out_dtype),     # value
        jax.ShapeDtypeStruct((B, 1), jnp.float32),   # per-row logsumexp
    )
    out_specs = (
        pl.BlockSpec((tb, A), lambda i: (i, 0)),
        pl.BlockSpec((tb, 1), lambda i: (i, 0)),
        pl.BlockSpec((tb, 1), lambda i: (i, 0)),
    )

    def _build_call(single_buffer_weights):
        in_specs = [
            pl.BlockSpec((tb, D), lambda i: (i, 0)),              # x: streamed
            _resident_spec((D, a_pad), single_buffer_weights),    # packed W
            _resident_spec((1, a_pad), single_buffer_weights),    # packed b
        ]
        return pl.pallas_call(
            kernel,
            out_shape=out_shape,
            grid=grid,
            in_specs=in_specs,
            out_specs=out_specs,
            compiler_params=pltpu.CompilerParams(
                dimension_semantics=("parallel",),
                vmem_limit_bytes=vmem_limit,
            ),
        )

    try:
        logits, value2d, lse = _build_call(True)(x, w_packed, b_packed)
    except Exception:
        # Fallback for jax versions without BlockSpec pipeline_mode support.
        logits, value2d, lse = _build_call(False)(x, w_packed, b_packed)

    return CategoricalLogits(logits, lse), value2d[:, 0]


# ----------------------------------------------------------------------------
# Deterministic parameter init (orthogonal, matching nn.init.orthogonal_ style)
# ----------------------------------------------------------------------------
def orthogonal_init(key, out_features, in_features, gain=1.0):
    """Mimics nn.init.orthogonal_ on a [out, in] weight, returned as [in, out]."""
    n_rows, n_cols = out_features, in_features
    flat = jax.random.normal(key, (n_rows, n_cols), dtype=jnp.float32)
    if n_rows < n_cols:
        flat = flat.T
    q, r = jnp.linalg.qr(flat)
    q = q * jnp.sign(jnp.diagonal(r))
    if n_rows < n_cols:
        q = q.T
    w = gain * q[:n_rows, :n_cols]     # PyTorch layout [out, in]
    return w.T                          # kernel layout [in, out]


if __name__ == "__main__":
    B, D, A = 2, 32, 8  # batch, input_size, num_actions

    key = jax.random.PRNGKey(0)
    kx, kpi, kv = jax.random.split(key, 3)

    x = jax.random.normal(kx, (B, D), dtype=jnp.float32)

    # CategoricalHead: orthogonal init with gain=0.01, bias = 0
    w_pi = orthogonal_init(kpi, A, D, gain=0.01)        # [D, A]
    b_pi = jnp.zeros((1, A), dtype=jnp.float32)

    # ValueHead: orthogonal init with default gain=1.0, bias = 0
    w_v = orthogonal_init(kv, 1, D, gain=1.0)           # [D, 1]
    b_v = jnp.zeros((1, 1), dtype=jnp.float32)

    # Packing happens once at init time (not per forward call).
    w_packed, b_packed = pack_categorical_value_head_params(w_pi, b_pi, w_v, b_v)

    dist_out, value = categorical_value_head(x, w_packed, b_packed, A)
    logits = dist_out.logits
    log_probs = dist_out.log_probs
    jax.block_until_ready((logits, log_probs, value))

    # sanity check against plain-JAX reference
    ref_logits = x @ w_pi + b_pi
    ref_logp = ref_logits - jax.scipy.special.logsumexp(
        ref_logits, axis=-1, keepdims=True)
    ref_value = (x @ w_v + b_v)[:, 0]
    assert jnp.allclose(logits, ref_logits, atol=1e-5)
    assert jnp.allclose(log_probs, ref_logp, atol=1e-5)
    assert jnp.allclose(value, ref_value, atol=1e-5)

    print("KERNEL_OK")
</pallas_src>

<mosaic_0001>
module attributes {stable_mosaic.version = 11 : i64} {
  func.func @_cat_value_head_kernel(%arg0: i32, %arg1: memref<2x32xf32, #tpu.memory_space<vmem>>, %arg2: memref<32x128xf32, #tpu.memory_space<vmem>>, %arg3: memref<1x128xf32, #tpu.memory_space<vmem>>, %arg4: memref<2x8xf32, #tpu.memory_space<vmem>>, %arg5: memref<2x1xf32, #tpu.memory_space<vmem>>, %arg6: memref<2x1xf32, #tpu.memory_space<vmem>>) attributes {dimension_semantics = [#tpu.dimension_semantics<parallel>], iteration_bounds = array<i64: 1>, scalar_prefetch = 0 : i64, scratch_operands = 0 : i64, tpu.core_type = #tpu.core_type<tc>, window_params = [{transform_indices = @transform_0, window_bounds = array<i64: 2, 32>}, {pipeline_mode = #tpu.pipeline_mode<synchronous>, transform_indices = @transform_1, window_bounds = array<i64: 32, 128>}, {pipeline_mode = #tpu.pipeline_mode<synchronous>, transform_indices = @transform_2, window_bounds = array<i64: 1, 128>}, {transform_indices = @transform_3, window_bounds = array<i64: 2, 8>}, {transform_indices = @transform_4, window_bounds = array<i64: 2, 1>}, {transform_indices = @transform_5, window_bounds = array<i64: 2, 1>}]} {
    %c0 = arith.constant 0 : index
    %c0_0 = arith.constant 0 : index
    %0 = vector.load %arg1[%c0, %c0_0] : memref<2x32xf32, #tpu.memory_space<vmem>>, vector<2x32xf32>
    %c0_1 = arith.constant 0 : index
    %c0_2 = arith.constant 0 : index
    %1 = vector.load %arg2[%c0_1, %c0_2] : memref<32x128xf32, #tpu.memory_space<vmem>>, vector<32x128xf32>
    %cst = arith.constant dense<0.000000e+00> : vector<2x128xf32>
    %2 = tpu.matmul %0, %1, %cst {dimension_numbers = #tpu.dot_dimension_numbers<[1], [0], [0], [1], [0, 0, 1, 1], [], []>} : vector<2x32xf32>, vector<32x128xf32>, vector<2x128xf32> -> vector<2x128xf32>
    %c0_3 = arith.constant 0 : index
    %c0_4 = arith.constant 0 : index
    %3 = vector.load %arg3[%c0_3, %c0_4] : memref<1x128xf32, #tpu.memory_space<vmem>>, vector<1x128xf32>
    %4 = vector.broadcast %3 : vector<1x128xf32> to vector<2x128xf32>
    %5 = arith.addf %2, %4 : vector<2x128xf32>
    %6 = tpu.iota {dimensions = array<i32: 1>} : vector<1x128xi32>
    %c8_i32 = arith.constant 8 : i32
    %7 = vector.broadcast %c8_i32 : i32 to vector<1x128xi32>
    %8 = arith.cmpi slt, %6, %7 : vector<1x128xi32>
    %cst_5 = arith.constant 0xFF800000 : f32
    %9 = vector.shape_cast %8 : vector<1x128xi1> to vector<1x128xi1>
    %10 = vector.broadcast %9 : vector<1x128xi1> to vector<2x128xi1>
    %11 = vector.broadcast %cst_5 : f32 to vector<2x128xf32>
    %12 = arith.select %10, %5, %11 : vector<2x128xi1>, vector<2x128xf32>
    %cst_6 = arith.constant dense<0xFF800000> : vector<2xf32>
    %13 = vector.multi_reduction <maximumf>, %12, %cst_6 [1] : vector<2x128xf32> to vector<2xf32>
    %14 = vector.shape_cast %13 : vector<2xf32> to vector<2x1xf32>
    %15 = vector.broadcast %14 : vector<2x1xf32> to vector<2x128xf32>
    %16 = arith.subf %12, %15 : vector<2x128xf32>
    %17 = math.exp %16 : vector<2x128xf32>
    %cst_7 = arith.constant dense<0.000000e+00> : vector<2xf32>
    %18 = vector.multi_reduction <add>, %17, %cst_7 [1] : vector<2x128xf32> to vector<2xf32>
    %19 = vector.shape_cast %18 : vector<2xf32> to vector<2x1xf32>
    %20 = math.log %19 : vector<2x1xf32>
    %21 = arith.addf %14, %20 : vector<2x1xf32>
    %22 = vector.extract_strided_slice %5 {offsets = [0, 0], sizes = [2, 8], strides = [1, 1]} : vector<2x128xf32> to vector<2x8xf32>
    %c0_8 = arith.constant 0 : index
    %c0_9 = arith.constant 0 : index
    %23 = vector.load %arg4[%c0_8, %c0_9] : memref<2x8xf32, #tpu.memory_space<vmem>>, vector<2x8xf32>
    tpu.vector_store %arg4[%c0_8, %c0_9], %22 {strides = array<i32>} : memref<2x8xf32, #tpu.memory_space<vmem>>, vector<2x8xf32>,
    %24 = vector.extract_strided_slice %5 {offsets = [0, 8], sizes = [2, 1], strides = [1, 1]} : vector<2x128xf32> to vector<2x1xf32>
    %c0_10 = arith.constant 0 : index
    %c0_11 = arith.constant 0 : index
    %25 = vector.load %arg5[%c0_10, %c0_11] : memref<2x1xf32, #tpu.memory_space<vmem>>, vector<2x1xf32>
    tpu.vector_store %arg5[%c0_10, %c0_11], %24 {strides = array<i32>} : memref<2x1xf32, #tpu.memory_space<vmem>>, vector<2x1xf32>,
    %c0_12 = arith.constant 0 : index
    %c0_13 = arith.constant 0 : index
    %26 = vector.load %arg6[%c0_12, %c0_13] : memref<2x1xf32, #tpu.memory_space<vmem>>, vector<2x1xf32>
    tpu.vector_store %arg6[%c0_12, %c0_13], %21 {strides = array<i32>} : memref<2x1xf32, #tpu.memory_space<vmem>>, vector<2x1xf32>,
    return
  }
  func.func @transform_0(%arg0: i32) -> (i32, i32) {
    %c0_i32 = arith.constant 0 : i32
    %c0_i32_0 = arith.constant 0 : i32
    return %arg0, %c0_i32 : i32, i32
  }
  func.func @transform_1(%arg0: i32) -> (i32, i32) {
    %c0_i32 = arith.constant 0 : i32
    %c0_i32_0 = arith.constant 0 : i32
    %c0_i32_1 = arith.constant 0 : i32
    return %c0_i32, %c0_i32_0 : i32, i32
  }
  func.func @transform_2(%arg0: i32) -> (i32, i32) {
    %c0_i32 = arith.constant 0 : i32
    %c0_i32_0 = arith.constant 0 : i32
    %c0_i32_1 = arith.constant 0 : i32
    return %c0_i32, %c0_i32_0 : i32, i32
  }
  func.func @transform_3(%arg0: i32) -> (i32, i32) {
    %c0_i32 = arith.constant 0 : i32
    %c0_i32_0 = arith.constant 0 : i32
    return %arg0, %c0_i32 : i32, i32
  }
  func.func @transform_4(%arg0: i32) -> (i32, i32) {
    %c0_i32 = arith.constant 0 : i32
    %c0_i32_0 = arith.constant 0 : i32
    return %arg0, %c0_i32 : i32, i32
  }
  func.func @transform_5(%arg0: i32) -> (i32, i32) {
    %c0_i32 = arith.constant 0 : i32
    %c0_i32_0 = arith.constant 0 : i32
    return %arg0, %c0_i32 : i32, i32
  }
}

module attributes {stable_mosaic.version = 11 : i64} {
  func.func @_cat_value_head_kernel(%arg0: i32, %arg1: memref<2x32xf32, #tpu.memory_space<vmem>>, %arg2: memref<32x128xf32, #tpu.memory_space<vmem>>, %arg3: memref<1x128xf32, #tpu.memory_space<vmem>>, %arg4: memref<2x8xf32, #tpu.memory_space<vmem>>, %arg5: memref<2x1xf32, #tpu.memory_space<vmem>>, %arg6: memref<2x1xf32, #tpu.memory_space<vmem>>) attributes {dimension_semantics = [#tpu.dimension_semantics<parallel>], iteration_bounds = array<i64: 1>, scalar_prefetch = 0 : i64, scratch_operands = 0 : i64, tpu.core_type = #tpu.core_type<tc>, window_params = [{transform_indices = @transform_0, window_bounds = array<i64: 2, 32>}, {pipeline_mode = #tpu.pipeline_mode<synchronous>, transform_indices = @transform_1, window_bounds = array<i64: 32, 128>}, {pipeline_mode = #tpu.pipeline_mode<synchronous>, transform_indices = @transform_2, window_bounds = array<i64: 1, 128>}, {transform_indices = @transform_3, window_bounds = array<i64: 2, 8>}, {transform_indices = @transform_4, window_bounds = array<i64: 2, 1>}, {transform_indices = @transform_5, window_bounds = array<i64: 2, 1>}]} {
    %c0 = arith.constant 0 : index
    %c0_0 = arith.constant 0 : index
    %0 = vector.load %arg1[%c0, %c0_0] : memref<2x32xf32, #tpu.memory_space<vmem>>, vector<2x32xf32>
    %c0_1 = arith.constant 0 : index
    %c0_2 = arith.constant 0 : index
    %1 = vector.load %arg2[%c0_1, %c0_2] : memref<32x128xf32, #tpu.memory_space<vmem>>, vector<32x128xf32>
    %cst = arith.constant dense<0.000000e+00> : vector<2x128xf32>
    %2 = tpu.matmul %0, %1, %cst {dimension_numbers = #tpu.dot_dimension_numbers<[1], [0], [0], [1], [0, 0, 1, 1], [], []>} : vector<2x32xf32>, vector<32x128xf32>, vector<2x128xf32> -> vector<2x128xf32>
    %c0_3 = arith.constant 0 : index
    %c0_4 = arith.constant 0 : index
    %3 = vector.load %arg3[%c0_3, %c0_4] : memref<1x128xf32, #tpu.memory_space<vmem>>, vector<1x128xf32>
    %4 = vector.broadcast %3 : vector<1x128xf32> to vector<2x128xf32>
    %5 = arith.addf %2, %4 : vector<2x128xf32>
    %6 = tpu.iota {dimensions = array<i32: 1>} : vector<1x128xi32>
    %c8_i32 = arith.constant 8 : i32
    %7 = vector.broadcast %c8_i32 : i32 to vector<1x128xi32>
    %8 = arith.cmpi slt, %6, %7 : vector<1x128xi32>
    %cst_5 = arith.constant 0xFF800000 : f32
    %9 = vector.shape_cast %8 : vector<1x128xi1> to vector<1x128xi1>
    %10 = vector.broadcast %9 : vector<1x128xi1> to vector<2x128xi1>
    %11 = vector.broadcast %cst_5 : f32 to vector<2x128xf32>
    %12 = arith.select %10, %5, %11 : vector<2x128xi1>, vector<2x128xf32>
    %cst_6 = arith.constant dense<0xFF800000> : vector<2xf32>
    %13 = vector.multi_reduction <maximumf>, %12, %cst_6 [1] : vector<2x128xf32> to vector<2xf32>
    %14 = vector.shape_cast %13 : vector<2xf32> to vector<2x1xf32>
    %15 = vector.broadcast %14 : vector<2x1xf32> to vector<2x128xf32>
    %16 = arith.subf %12, %15 : vector<2x128xf32>
    %17 = math.exp %16 : vector<2x128xf32>
    %cst_7 = arith.constant dense<0.000000e+00> : vector<2xf32>
    %18 = vector.multi_reduction <add>, %17, %cst_7 [1] : vector<2x128xf32> to vector<2xf32>
    %19 = vector.shape_cast %18 : vector<2xf32> to vector<2x1xf32>
    %20 = math.log %19 : vector<2x1xf32>
    %21 = arith.addf %14, %20 : vector<2x1xf32>
    %22 = vector.extract_strided_slice %5 {offsets = [0, 0], sizes = [2, 8], strides = [1, 1]} : vector<2x128xf32> to vector<2x8xf32>
    %c0_8 = arith.constant 0 : index
    %c0_9 = arith.constant 0 : index
    %23 = vector.load %arg4[%c0_8, %c0_9] : memref<2x8xf32, #tpu.memory_space<vmem>>, vector<2x8xf32>
    tpu.vector_store %arg4[%c0_8, %c0_9], %22 {strides = array<i32>} : memref<2x8xf32, #tpu.memory_space<vmem>>, vector<2x8xf32>,
    %24 = vector.extract_strided_slice %5 {offsets = [0, 8], sizes = [2, 1], strides = [1, 1]} : vector<2x128xf32> to vector<2x1xf32>
    %c0_10 = arith.constant 0 : index
    %c0_11 = arith.constant 0 : index
    %25 = vector.load %arg5[%c0_10, %c0_11] : memref<2x1xf32, #tpu.memory_space<vmem>>, vector<2x1xf32>
    tpu.vector_store %arg5[%c0_10, %c0_11], %24 {strides = array<i32>} : memref<2x1xf32, #tpu.memory_space<vmem>>, vector<2x1xf32>,
    %c0_12 = arith.constant 0 : index
    %c0_13 = arith.constant 0 : index
    %26 = vector.load %arg6[%c0_12, %c0_13] : memref<2x1xf32, #tpu.memory_space<vmem>>, vector<2x1xf32>
    tpu.vector_store %arg6[%c0_12, %c0_13], %21 {strides = array<i32>} : memref<2x1xf32, #tpu.memory_space<vmem>>, vector<2x1xf32>,
    return
  }
  func.func @transform_0(%arg0: i32) -> (i32, i32) {
    %c0_i32 = arith.constant 0 : i32
    %c0_i32_0 = arith.constant 0 : i32
    return %arg0, %c0_i32 : i32, i32
  }
  func.func @transform_1(%arg0: i32) -> (i32, i32) {
    %c0_i32 = arith.constant 0 : i32
    %c0_i32_0 = arith.constant 0 : i32
    %c0_i32_1 = arith.constant 0 : i32
    return %c0_i32, %c0_i32_0 : i32, i32
  }
  func.func @transform_2(%arg0: i32) -> (i32, i32) {
    %c0_i32 = arith.constant 0 : i32
    %c0_i32_0 = arith.constant 0 : i32
    %c0_i32_1 = arith.constant 0 : i32
    return %c0_i32, %c0_i32_0 : i32, i32
  }
  func.func @transform_3(%arg0: i32) -> (i32, i32) {
    %c0_i32 = arith.constant 0 : i32
    %c0_i32_0 = arith.constant 0 : i32
    return %arg0, %c0_i32 : i32, i32
  }
  func.func @transform_4(%arg0: i32) -> (i32, i32) {
    %c0_i32 = arith.constant 0 : i32
    %c0_i32_0 = arith.constant 0 : i32
    return %arg0, %c0_i32 : i32, i32
  }
  func.func @transform_5(%arg0: i32) -> (i32, i32) {
    %c0_i32 = arith.constant 0 : i32
    %c0_i32_0 = arith.constant 0 : i32
    return %arg0, %c0_i32 : i32, i32
  }
}

</mosaic_0001>

<bundles_post_ra>
// kernel: tpu_custom_call.1
= control target key start
LH: loop header
LB: loop body
LE: loop exit
PB: predicated region body
PF: predicated region fallthrough
CT: control target
= control target key end

     0   :  { %11 = vsyncpa [#allocation3], 0  ;;  %s384_s0 = inlined_call_operand.hbm [shape: f32[2,32], index: 0, kind: input, shape index: {}]   ;;  %s385_s1 = inlined_call_operand.hbm [shape: f32[32,128], index: 1, kind: input, shape index: {}]   ;;  %s386_s2 = inlined_call_operand.vmem [shape: f32[1,128], index: 2, kind: input, shape index: {}]   ;;  %s387_s3 = inlined_call_operand.hbm [shape: f32[2,8], index: 3, kind: output, shape index: {0}]   ;;  %s388_s4 = inlined_call_operand.vmem [shape: f32[2,1], index: 4, kind: output, shape index: {1}]   ;;  %s389_s5 = inlined_call_operand.vmem [shape: f32[2,1], index: 5, kind: output, shape index: {2}]  }
   0x1   :  { %12 = vsyncpa [#allocation6], 0 }
   0x2   :  { %13 = vsyncpa [#allocation4], 0  ;;  %s291_s18 = smov [#allocation2]   ;;  %s292_s20 = smov [#allocation5]  }
   0x3   :  { %s20_s19 = sshll.u32 %s291_s18, 4  ;;  %s29_s21 = sshll.u32 %s292_s20, 4  ;;  %s21_s19 = int_to_ptr.vmem [resolvable:$true] %s20_s19  ;;  %s330_s21 = int_to_ptr.vmem [resolvable:$true] %s29_s21 }
   0x4   :  { %s219_s24 = scalar_lea.hbm %s384_s0, 32 }
   0x5   :  { %p220_p0 = scmp.ne.s32.totalorder %s384_s0, %s219_s24  ;;  %p223_p1 = scmp.lt.u32.totalorder %s219_s24, %s384_s0 }
   0x7   :  { %p225_p2 = pnand %p223_p1, %p220_p0 }
   0x9   :  { %228 = shalt.err (!%p225_p2)
}
   0xa   :  { %s229_s29 = scalar_lea.vmem %s21_s19, 32  ;;  %p234_p4 = scmp.lt.s32.totalorder %s21_s19, %s21_s19 }
   0xb   :  { %p230_p3 = scmp.ne.s32.totalorder %s21_s19, %s229_s29  ;;  %p235_p5 = scmp.lt.s32.totalorder %s229_s29, %s229_s29 }
   0xd   :  { %p236_p6 = por %p235_p5, %p234_p4 }
   0xf   :  { %p237_p7 = pnand %p236_p6, %p230_p3 }
  0x11   :  { %240 = shalt.err (!%p237_p7)
}
  0x12   :  { %23 = dma.hbm_to_vmem [thread:$0]  %s384_s0, 32, %s21_s19, [#allocation3]  }
  0x13   :  { %s241_s9 = scalar_lea.hbm %s385_s1, 512 }
  0x14   :  { %p242_p8 = scmp.ne.s32.totalorder %s385_s1, %s241_s9  ;;  %p245_p9 = scmp.lt.u32.totalorder %s241_s9, %s385_s1 }
  0x16   :  { %p247_p10 = pnand %p245_p9, %p242_p8 }
  0x18   :  { %250 = shalt.err (!%p247_p10)
}
  0x19   :  { %s251_s14 = scalar_lea.vmem %s330_s21, 512  ;;  %p256_p12 = scmp.lt.s32.totalorder %s330_s21, %s330_s21 }
  0x1a   :  { %p252_p11 = scmp.ne.s32.totalorder %s330_s21, %s251_s14  ;;  %p257_p13 = scmp.lt.s32.totalorder %s251_s14, %s251_s14 }
  0x1c   :  { %p258_p0 = por %p257_p13, %p256_p12 }
  0x1e   :  { %p259_p1 = pnand %p258_p0, %p252_p11 }
  0x20   :  { %262 = shalt.err (!%p259_p1)
}
  0x21   :  { %s293_s0 = smov 128   ;;  %s294_s15 = smov 8  }
  0x22   :  { %35 = dma.hbm_to_vmem [thread:$0]  %s385_s1, 512, %s330_s21, [#allocation6], %s293_s0, %s293_s0, %s294_s15  }
  0x23   :  { %285 = dma.done.wait [#allocation3], 32  }
  0x24   :  { %286 = vsyncadd [#allocation3], 4294967264 }
  0x25   :  { %287 = dma.done.wait [#allocation6], 512  }
  0x26   :  { %288 = vsyncadd [#allocation6], 4294966784  ;;  %v295_v0 = vmov 0.0|0.0   ;;  %vm296_vm0 = vmmov 0   ;;  %v297_v1 = vmov 0.0   ;;  %v45_v2 = vld [vmem:[#allocation5] sm:$0xff]  ;;  %v130_v9 = vlaneseq }
  0x27   :  { %200 = vmatprep.subr.bf16.mxu0 %v295_v0  ;;  %197 = vmatprep.mubr.msk.f32.mxu0 %vm296_vm0, %v297_v1  ;;  %v46_v3 = vld [vmem:[#allocation5 + $0x8] sm:$0xff]  ;;  %v47_v4 = vld [vmem:[#allocation5 + $0x10] sm:$0xff]  ;;  %v48_v6 = vld [vmem:[#allocation5 + $0x18] sm:$0xff]  ;;  %vm56_vm1 = vcmask 261120   ;;  %vm149_vm3 = vcmask 58368   ;;  %vm136_vm4 = vcmask 1041408  }
  0x28   :  { %v201_v5 = vpack.c.bf16 %v46_v3, %v45_v2  ;;  %v204_v7 = vpack.c.bf16 %v48_v6, %v47_v4  ;;  %v44_v8 = vld [vmem:[#allocation2] sm:$0x3]  ;;  %v131_v10 = vand.u32 127, %v130_v9  ;;  %s298_s19 = smov 120   ;;  %vm155_vm5 = vcmask 1024  }
  0x29   :  { %v182_v11 = vld [vmem:[%s386_s2] ss:$0 sm:$0xff]  ;;  %s299_s2 = smov [#allocation7]  }
  0x2a   :  { %202 = vmatpush3.bf16.msra.mxu0 %v201_v5  ;;  %vm132_vm2 = vcmp.lt.s32.totalorder %v131_v10, 8  ;;  %s164_s22 = sshll.u32 %s299_s2, 4  ;;  %s165_s22 = int_to_ptr.vmem [resolvable:$true] %s164_s22 }
  0x2b   :  { %203 = vmatprep.subr.bf16.mxu0 %v295_v0  ;;  %s263_s23 = scalar_lea.vmem %s165_s22, 32  ;;  %p268_p3 = scmp.lt.s32.totalorder %s165_s22, %s165_s22 }
  0x2c   :  { %p264_p2 = scmp.ne.s32.totalorder %s165_s22, %s263_s23  ;;  %p269_p4 = scmp.lt.s32.totalorder %s263_s23, %s263_s23 }
  0x2e   :  { %205 = vmatpush3.bf16.msra.mxu0 %v204_v7  ;;  %p270_p5 = por %p269_p4, %p268_p3 }
  0x30   :  { %p271_p6 = pnand %p270_p5, %p264_p2 }
  0x31   :  { %198 = vmatmul.mubr.msk.f32.vlgmr.msra.gmra.mrb[0].mxu0 %vm56_vm1, %v44_v8 }
 0x104   :  { %v126_v12 = vpop.f32.mrb[0].mxu0 }
 0x105   :  { %v127_v13 = vadd.f32 %v182_v11, %v126_v12  ;;  %v199_v14 = vpop.f32.mrb[1].mxu0 }
 0x107   :  { %152 = vrot.lane.b32.xlu1 %v127_v13, %s298_s19  ;;  %v135_v15 = vsel %vm132_vm2, %v127_v13, -inf  ;;  %150 = vst.msk [vmem:[#allocation7] sm:$0x3] %vm149_vm3, %v127_v13 }
 0x108   :  { %v137_v16 = vsel %vm136_vm4, %v135_v15, -inf }
 0x109   :  { %138 = vmax.xlane.f32.xlu0 %v137_v16 }
 0x179   :  { %v153_v17 = vpop.permute.xlu1 %152 }
 0x17a   :  { %156 = vst.msk [vmem:[%s388_s4] sm:$0x3] %vm155_vm5, %v153_v17 }
 0x196   :  { %v139_v18 = vpop.xlane.xlu0 %138 }
 0x197   :  { %v140_v19 = vsub.f32 %v135_v15, %v139_v18 }
 0x199   :  { %v141_v20 = vmul.f32 1.442695, %v140_v19 }
 0x19b   :  { %215 = vpow2.f32 %v141_v20 }
 0x1a5   :  { %v216_v21 = vpop.eup %215 }
 0x1a6   :  { %v143_v22 = vsel %vm136_vm4, %v216_v21, 0.0 }
 0x1a7   :  { %144 = vadd.xlane.f32.xlu0 %v143_v22 }
 0x1a8   :  { %274 = shalt.err (!%p271_p6)
}
 0x1a9   :  { %s275_s4 = scalar_lea.hbm %s387_s3, 32 }
 0x1aa   :  { %p276_p7 = scmp.ne.s32.totalorder %s387_s3, %s275_s4  ;;  %p279_p8 = scmp.lt.u32.totalorder %s275_s4, %s387_s3 }
 0x1ac   :  { %p281_p9 = pnand %p279_p8, %p276_p7 }
 0x1ae   :  { %284 = shalt.err (!%p281_p9)
}
 0x1af   :  { %167 = dma.vmem_to_hbm [thread:$0]  %s165_s22, 32, %s387_s3, [#allocation4]  }
 0x234   :  { %v145_v23 = vpop.xlane.xlu0 %144 }
 0x235   :  { %217 = vlog2.f32 %v145_v23 }
 0x23f   :  { %v218_v24 = vpop.eup %217 }
 0x240   :  { %v147_v25 = vmul.f32 0.6931472, %v218_v24 }
 0x242   :  { %v148_v26 = vadd.f32 %v147_v25, %v139_v18 }
 0x244   :  { %157 = vst.msk [vmem:[%s389_s5] sm:$0x3] %vm155_vm5, %v148_v26 }
 0x245   :  { %289 = dma.done.wait [#allocation4], 32  }
 0x246   :  { %290 = vsyncadd [#allocation4], 4294967264 }
 0x247   :  { %179 = vsyncpa [#allocation3], 1 }
 0x248   :  { %180 = vsyncpa [#allocation6], 1 }
 0x249   :  { %181 = vsyncpa [#allocation4], 1 }

// kernel: tpu_custom_call.1
= control target key start
LH: loop header
LB: loop body
LE: loop exit
PB: predicated region body
PF: predicated region fallthrough
CT: control target
= control target key end

     0   :  { %11 = vsyncpa [#allocation3], 0  ;;  %s384_s0 = inlined_call_operand.hbm [shape: f32[2,32], index: 0, kind: input, shape index: {}]   ;;  %s385_s1 = inlined_call_operand.hbm [shape: f32[32,128], index: 1, kind: input, shape index: {}]   ;;  %s386_s2 = inlined_call_operand.vmem [shape: f32[1,128], index: 2, kind: input, shape index: {}]   ;;  %s387_s3 = inlined_call_operand.hbm [shape: f32[2,8], index: 3, kind: output, shape index: {0}]   ;;  %s388_s4 = inlined_call_operand.vmem [shape: f32[2,1], index: 4, kind: output, shape index: {1}]   ;;  %s389_s5 = inlined_call_operand.vmem [shape: f32[2,1], index: 5, kind: output, shape index: {2}]  }
   0x1   :  { %12 = vsyncpa [#allocation6], 0 }
   0x2   :  { %13 = vsyncpa [#allocation4], 0  ;;  %s291_s18 = smov [#allocation2]   ;;  %s292_s20 = smov [#allocation5]  }
   0x3   :  { %s20_s19 = sshll.u32 %s291_s18, 4  ;;  %s29_s21 = sshll.u32 %s292_s20, 4  ;;  %s21_s19 = int_to_ptr.vmem [resolvable:$true] %s20_s19  ;;  %s330_s21 = int_to_ptr.vmem [resolvable:$true] %s29_s21 }
   0x4   :  { %s219_s24 = scalar_lea.hbm %s384_s0, 32 }
   0x5   :  { %p220_p0 = scmp.ne.s32.totalorder %s384_s0, %s219_s24  ;;  %p223_p1 = scmp.lt.u32.totalorder %s219_s24, %s384_s0 }
   0x7   :  { %p225_p2 = pnand %p223_p1, %p220_p0 }
   0x9   :  { %228 = shalt.err (!%p225_p2)
}
   0xa   :  { %s229_s29 = scalar_lea.vmem %s21_s19, 32  ;;  %p234_p4 = scmp.lt.s32.totalorder %s21_s19, %s21_s19 }
   0xb   :  { %p230_p3 = scmp.ne.s32.totalorder %s21_s19, %s229_s29  ;;  %p235_p5 = scmp.lt.s32.totalorder %s229_s29, %s229_s29 }
   0xd   :  { %p236_p6 = por %p235_p5, %p234_p4 }
   0xf   :  { %p237_p7 = pnand %p236_p6, %p230_p3 }
  0x11   :  { %240 = shalt.err (!%p237_p7)
}
  0x12   :  { %23 = dma.hbm_to_vmem [thread:$0]  %s384_s0, 32, %s21_s19, [#allocation3]  }
  0x13   :  { %s241_s9 = scalar_lea.hbm %s385_s1, 512 }
  0x14   :  { %p242_p8 = scmp.ne.s32.totalorder %s385_s1, %s241_s9  ;;  %p245_p9 = scmp.lt.u32.totalorder %s241_s9, %s385_s1 }
  0x16   :  { %p247_p10 = pnand %p245_p9, %p242_p8 }
  0x18   :  { %250 = shalt.err (!%p247_p10)
}
  0x19   :  { %s251_s14 = scalar_lea.vmem %s330_s21, 512  ;;  %p256_p12 = scmp.lt.s32.totalorder %s330_s21, %s330_s21 }
  0x1a   :  { %p252_p11 = scmp.ne.s32.totalorder %s330_s21, %s251_s14  ;;  %p257_p13 = scmp.lt.s32.totalorder %s251_s14, %s251_s14 }
  0x1c   :  { %p258_p0 = por %p257_p13, %p256_p12 }
  0x1e   :  { %p259_p1 = pnand %p258_p0, %p252_p11 }
  0x20   :  { %262 = shalt.err (!%p259_p1)
}
  0x21   :  { %s293_s0 = smov 128   ;;  %s294_s15 = smov 8  }
  0x22   :  { %35 = dma.hbm_to_vmem [thread:$0]  %s385_s1, 512, %s330_s21, [#allocation6], %s293_s0, %s293_s0, %s294_s15  }
  0x23   :  { %285 = dma.done.wait [#allocation3], 32  }
  0x24   :  { %286 = vsyncadd [#allocation3], 4294967264 }
  0x25   :  { %287 = dma.done.wait [#allocation6], 512  }
  0x26   :  { %288 = vsyncadd [#allocation6], 4294966784  ;;  %v295_v0 = vmov 0.0|0.0   ;;  %vm296_vm0 = vmmov 0   ;;  %v297_v1 = vmov 0.0   ;;  %v45_v2 = vld [vmem:[#allocation5] sm:$0xff]  ;;  %v130_v9 = vlaneseq }
  0x27   :  { %200 = vmatprep.subr.bf16.mxu0 %v295_v0  ;;  %197 = vmatprep.mubr.msk.f32.mxu0 %vm296_vm0, %v297_v1  ;;  %v46_v3 = vld [vmem:[#allocation5 + $0x8] sm:$0xff]  ;;  %v47_v4 = vld [vmem:[#allocation5 + $0x10] sm:$0xff]  ;;  %v48_v6 = vld [vmem:[#allocation5 + $0x18] sm:$0xff]  ;;  %vm56_vm1 = vcmask 261120   ;;  %vm149_vm3 = vcmask 58368   ;;  %vm136_vm4 = vcmask 1041408  }
  0x28   :  { %v201_v5 = vpack.c.bf16 %v46_v3, %v45_v2  ;;  %v204_v7 = vpack.c.bf16 %v48_v6, %v47_v4  ;;  %v44_v8 = vld [vmem:[#allocation2] sm:$0x3]  ;;  %v131_v10 = vand.u32 127, %v130_v9  ;;  %s298_s19 = smov 120   ;;  %vm155_vm5 = vcmask 1024  }
  0x29   :  { %v182_v11 = vld [vmem:[%s386_s2] ss:$0 sm:$0xff]  ;;  %s299_s2 = smov [#allocation7]  }
  0x2a   :  { %202 = vmatpush3.bf16.msra.mxu0 %v201_v5  ;;  %vm132_vm2 = vcmp.lt.s32.totalorder %v131_v10, 8  ;;  %s164_s22 = sshll.u32 %s299_s2, 4  ;;  %s165_s22 = int_to_ptr.vmem [resolvable:$true] %s164_s22 }
  0x2b   :  { %203 = vmatprep.subr.bf16.mxu0 %v295_v0  ;;  %s263_s23 = scalar_lea.vmem %s165_s22, 32  ;;  %p268_p3 = scmp.lt.s32.totalorder %s165_s22, %s165_s22 }
  0x2c   :  { %p264_p2 = scmp.ne.s32.totalorder %s165_s22, %s263_s23  ;;  %p269_p4 = scmp.lt.s32.totalorder %s263_s23, %s263_s23 }
  0x2e   :  { %205 = vmatpush3.bf16.msra.mxu0 %v204_v7  ;;  %p270_p5 = por %p269_p4, %p268_p3 }
  0x30   :  { %p271_p6 = pnand %p270_p5, %p264_p2 }
  0x31   :  { %198 = vmatmul.mubr.msk.f32.vlgmr.msra.gmra.mrb[0].mxu0 %vm56_vm1, %v44_v8 }
 0x104   :  { %v126_v12 = vpop.f32.mrb[0].mxu0 }
 0x105   :  { %v127_v13 = vadd.f32 %v182_v11, %v126_v12  ;;  %v199_v14 = vpop.f32.mrb[1].mxu0 }
 0x107   :  { %152 = vrot.lane.b32.xlu1 %v127_v13, %s298_s19  ;;  %v135_v15 = vsel %vm132_vm2, %v127_v13, -inf  ;;  %150 = vst.msk [vmem:[#allocation7] sm:$0x3] %vm149_vm3, %v127_v13 }
 0x108   :  { %v137_v16 = vsel %vm136_vm4, %v135_v15, -inf }
 0x109   :  { %138 = vmax.xlane.f32.xlu0 %v137_v16 }
 0x179   :  { %v153_v17 = vpop.permute.xlu1 %152 }
 0x17a   :  { %156 = vst.msk [vmem:[%s388_s4] sm:$0x3] %vm155_vm5, %v153_v17 }
 0x196   :  { %v139_v18 = vpop.xlane.xlu0 %138 }
 0x197   :  { %v140_v19 = vsub.f32 %v135_v15, %v139_v18 }
 0x199   :  { %v141_v20 = vmul.f32 1.442695, %v140_v19 }
 0x19b   :  { %215 = vpow2.f32 %v141_v20 }
 0x1a5   :  { %v216_v21 = vpop.eup %215 }
 0x1a6   :  { %v143_v22 = vsel %vm136_vm4, %v216_v21, 0.0 }
 0x1a7   :  { %144 = vadd.xlane.f32.xlu0 %v143_v22 }
 0x1a8   :  { %274 = shalt.err (!%p271_p6)
}
 0x1a9   :  { %s275_s4 = scalar_lea.hbm %s387_s3, 32 }
 0x1aa   :  { %p276_p7 = scmp.ne.s32.totalorder %s387_s3, %s275_s4  ;;  %p279_p8 = scmp.lt.u32.totalorder %s275_s4, %s387_s3 }
 0x1ac   :  { %p281_p9 = pnand %p279_p8, %p276_p7 }
 0x1ae   :  { %284 = shalt.err (!%p281_p9)
}
 0x1af   :  { %167 = dma.vmem_to_hbm [thread:$0]  %s165_s22, 32, %s387_s3, [#allocation4]  }
 0x234   :  { %v145_v23 = vpop.xlane.xlu0 %144 }
 0x235   :  { %217 = vlog2.f32 %v145_v23 }
 0x23f   :  { %v218_v24 = vpop.eup %217 }
 0x240   :  { %v147_v25 = vmul.f32 0.6931472, %v218_v24 }
 0x242   :  { %v148_v26 = vadd.f32 %v147_v25, %v139_v18 }
 0x244   :  { %157 = vst.msk [vmem:[%s389_s5] sm:$0x3] %vm155_vm5, %v148_v26 }
 0x245   :  { %289 = dma.done.wait [#allocation4], 32  }
 0x246   :  { %290 = vsyncadd [#allocation4], 4294967264 }
 0x247   :  { %179 = vsyncpa [#allocation3], 1 }
 0x248   :  { %180 = vsyncpa [#allocation6], 1 }
 0x249   :  { %181 = vsyncpa [#allocation4], 1 }

</bundles_post_ra>
